<compile_context>
chip_gen: v7x
topology: tpu7x:2x2x1
jax: 0.10.0
libtpu: 0.0.40
codegen_flags: <defaults>
</compile_context>

<pallas_src>
import jax
import jax.numpy as jnp
from jax import lax
from jax.experimental import pallas as pl
from jax.experimental.pallas import tpu as pltpu

# Problem sizes implied by the module (small, deterministic).
N, C_IN, H, W = 2, 3, 16, 16
C_OUT, KH, KW = 6, 3, 3
H_OUT, W_OUT = H - KH + 1, W - KW + 1          # stride=1, padding=0 -> 14, 14
P = H_OUT * W_OUT                               # 196 output pixels per image
K = C_IN * KH * KW                              # 27  reduction length


def _conv_gemm_kernel(p_ref, w_ref, b_ref, o_ref):
    """Whole batch in one invocation.

    p_ref: (N, K, P)      im2col patches (reduction on sublanes, pixels on lanes)
    w_ref: (C_OUT, K)     flattened conv weights (PyTorch order)
    b_ref: (C_OUT, 1)     bias column (broadcasts over the pixel/lane axis)
    o_ref: (N, C_OUT, P)  lane-dense output; reshapes directly to NCHW
    """
    w = w_ref[...]                                                   # (C_OUT, K)
    b = b_ref[...]                                                   # (C_OUT, 1)
    for n in range(N):                                               # static unroll (N=2)
        acc = jnp.dot(w, p_ref[n], preferred_element_type=jnp.float32)  # (C_OUT, P)
        o_ref[n] = (acc + b).astype(o_ref.dtype)


def _im2col(x):
    """NCHW -> (N, K, P); K index = ci*KH*KW + kh*KW + kw (matches PyTorch
    weight.reshape(C_OUT, C_IN*KH*KW)). No transpose needed."""
    cols = []
    for kh in range(KH):
        for kw in range(KW):
            cols.append(x[:, :, kh:kh + H_OUT, kw:kw + W_OUT])       # (N, C_IN, Ho, Wo)
    cols = jnp.stack(cols, axis=2)                                   # (N, C_IN, KH*KW, Ho, Wo)
    return cols.reshape(N, K, P)                                     # (N, 27, 196)


@jax.jit
def tudui_forward(x, weight, bias):
    """Equivalent of Tudui.forward: x (N,3,H,W) -> (N,6,H-2,W-2)."""
    patches = _im2col(x.astype(jnp.float32))                         # (N, K, P)
    w_flat = weight.reshape(C_OUT, K).astype(jnp.float32)            # (C_OUT, K)
    b_col = bias.reshape(C_OUT, 1).astype(jnp.float32)               # (C_OUT, 1)

    out = pl.pallas_call(
        _conv_gemm_kernel,
        out_shape=jax.ShapeDtypeStruct((N, C_OUT, P), jnp.float32),
        in_specs=[
            pl.BlockSpec(memory_space=pltpu.MemorySpace.VMEM),       # patches, resident
            pl.BlockSpec(memory_space=pltpu.MemorySpace.VMEM),       # weights, resident
            pl.BlockSpec(memory_space=pltpu.MemorySpace.VMEM),       # bias, resident
        ],
        out_specs=pl.BlockSpec(memory_space=pltpu.MemorySpace.VMEM),
    )(patches, w_flat, b_col)

    # (N, C_OUT, P) -> (N, C_OUT, H_OUT, W_OUT): pure reshape, no transpose.
    return out.reshape(N, C_OUT, H_OUT, W_OUT)


if __name__ == "__main__":
    key = jax.random.PRNGKey(0)
    kx, kw, kb = jax.random.split(key, 3)

    # Deterministic parameter init, mimicking PyTorch's U(-1/sqrt(fan_in), +1/sqrt(fan_in)).
    fan_in = C_IN * KH * KW
    bound = 1.0 / (fan_in ** 0.5)
    weight = jax.random.uniform(kw, (C_OUT, C_IN, KH, KW), jnp.float32, -bound, bound)
    bias = jax.random.uniform(kb, (C_OUT,), jnp.float32, -bound, bound)

    x = jax.random.normal(kx, (N, C_IN, H, W), jnp.float32)

    out = jax.block_until_ready(tudui_forward(x, weight, bias))

    # Reference check against XLA's native conv (NCHW, OIHW).
    ref = lax.conv_general_dilated(
        x, weight, window_strides=(1, 1), padding="VALID",
        dimension_numbers=("NCHW", "OIHW", "NCHW"),
    ) + bias.reshape(1, C_OUT, 1, 1)
    assert out.shape == (N, C_OUT, H_OUT, W_OUT), out.shape
    assert jnp.allclose(out, ref, rtol=1e-4, atol=1e-4), "mismatch vs reference conv"

    print("KERNEL_OK")
</pallas_src>

<mosaic_0001>
module attributes {stable_mosaic.version = 11 : i64} {
  func.func @_conv_gemm_kernel(%arg0: memref<2x27x196xf32, #tpu.memory_space<vmem>>, %arg1: memref<6x27xf32, #tpu.memory_space<vmem>>, %arg2: memref<6x1xf32, #tpu.memory_space<vmem>>, %arg3: memref<2x6x196xf32, #tpu.memory_space<vmem>>) attributes {dimension_semantics = [], scalar_prefetch = 0 : i64, scratch_operands = 0 : i64, tpu.core_type = #tpu.core_type<tc>} {
    %c0 = arith.constant 0 : index
    %c0_0 = arith.constant 0 : index
    %0 = vector.load %arg1[%c0, %c0_0] : memref<6x27xf32, #tpu.memory_space<vmem>>, vector<6x27xf32>
    %c0_1 = arith.constant 0 : index
    %c0_2 = arith.constant 0 : index
    %1 = vector.load %arg2[%c0_1, %c0_2] : memref<6x1xf32, #tpu.memory_space<vmem>>, vector<6x1xf32>
    %c0_3 = arith.constant 0 : index
    %c0_4 = arith.constant 0 : index
    %c0_5 = arith.constant 0 : index
    %2 = vector.load %arg0[%c0_3, %c0_4, %c0_5] : memref<2x27x196xf32, #tpu.memory_space<vmem>>, vector<1x27x196xf32>
    %3 = vector.shape_cast %2 : vector<1x27x196xf32> to vector<27x196xf32>
    %cst = arith.constant dense<0.000000e+00> : vector<6x196xf32>
    %4 = tpu.matmul %0, %3, %cst {dimension_numbers = #tpu.dot_dimension_numbers<[1], [0], [0], [1], [0, 0, 1, 1], [], []>} : vector<6x27xf32>, vector<27x196xf32>, vector<6x196xf32> -> vector<6x196xf32>
    %5 = vector.broadcast %1 : vector<6x1xf32> to vector<6x196xf32>
    %6 = arith.addf %4, %5 : vector<6x196xf32>
    %c0_6 = arith.constant 0 : index
    %c0_7 = arith.constant 0 : index
    %c0_8 = arith.constant 0 : index
    %7 = vector.load %arg3[%c0_6, %c0_7, %c0_8] : memref<2x6x196xf32, #tpu.memory_space<vmem>>, vector<1x6x196xf32>
    %8 = vector.shape_cast %7 : vector<1x6x196xf32> to vector<6x196xf32>
    %9 = vector.shape_cast %6 : vector<6x196xf32> to vector<1x6x196xf32>
    tpu.vector_store %arg3[%c0_6, %c0_7, %c0_8], %9 {strides = array<i32>} : memref<2x6x196xf32, #tpu.memory_space<vmem>>, vector<1x6x196xf32>,
    %c1 = arith.constant 1 : index
    %c0_9 = arith.constant 0 : index
    %c0_10 = arith.constant 0 : index
    %10 = vector.load %arg0[%c1, %c0_9, %c0_10] : memref<2x27x196xf32, #tpu.memory_space<vmem>>, vector<1x27x196xf32>
    %11 = vector.shape_cast %10 : vector<1x27x196xf32> to vector<27x196xf32>
    %cst_11 = arith.constant dense<0.000000e+00> : vector<6x196xf32>
    %12 = tpu.matmul %0, %11, %cst_11 {dimension_numbers = #tpu.dot_dimension_numbers<[1], [0], [0], [1], [0, 0, 1, 1], [], []>} : vector<6x27xf32>, vector<27x196xf32>, vector<6x196xf32> -> vector<6x196xf32>
    %13 = vector.broadcast %1 : vector<6x1xf32> to vector<6x196xf32>
    %14 = arith.addf %12, %13 : vector<6x196xf32>
    %c1_12 = arith.constant 1 : index
    %c0_13 = arith.constant 0 : index
    %c0_14 = arith.constant 0 : index
    %15 = vector.load %arg3[%c1_12, %c0_13, %c0_14] : memref<2x6x196xf32, #tpu.memory_space<vmem>>, vector<1x6x196xf32>
    %16 = vector.shape_cast %15 : vector<1x6x196xf32> to vector<6x196xf32>
    %17 = vector.shape_cast %14 : vector<6x196xf32> to vector<1x6x196xf32>
    tpu.vector_store %arg3[%c1_12, %c0_13, %c0_14], %17 {strides = array<i32>} : memref<2x6x196xf32, #tpu.memory_space<vmem>>, vector<1x6x196xf32>,
    return
  }
}

</mosaic_0001>

<bundles_post_ra>
// kernel: tudui_forward.1
= control target key start
LH: loop header
LB: loop body
LE: loop exit
PB: predicated region body
PF: predicated region fallthrough
CT: control target
= control target key end

     0   :  { %vm33_vm0 = vcmask 1042432   ;;  %v247_v3 = vmov 0.0   ;;  %v248_v8 = vmov 0   ;;  %vm249_vm1 = vmmov 1   ;;  %s349_s0 = inlined_call_operand.vmem [shape: f32[2,27,196], index: 0, kind: input, shape index: {}]   ;;  %s350_s2 = inlined_call_operand.vmem [shape: f32[6,1], index: 2, kind: input, shape index: {}]   ;;  %s351_s1 = inlined_call_operand.vmem [shape: f32[6,27], index: 1, kind: input, shape index: {}]   ;;  %s352_s3 = inlined_call_operand.vmem [shape: f32[2,6,196], index: 3, kind: output, shape index: {}]  }
   0x1   :  { %v17_v0 = vld [vmem:[%s349_s0 + $0x8] sm:$0xff]  ;;  %v19_v1 = vld [vmem:[%s349_s0 + $0x18] sm:$0xff]  ;;  %104 = vmatprep.mubr.f32.mxu0 %v247_v3  ;;  %193 = vmatprep.mubr.f32.mxu1 %v247_v3  ;;  %v16_v6 = vld [vmem:[%s349_s0] sm:$0xff]  ;;  %vm29_vm3 = vcmask 220160   ;;  %vm112_vm4 = vcmask 553984  }
   0x2   :  { %v211_v2 = vld [vmem:[%s349_s0 + $0x48] sm:$0xff]  ;;  %v223_v4 = vpack.c.bf16 %v19_v1, %v17_v0  ;;  %v213_v5 = vld [vmem:[%s349_s0 + $0x58] sm:$0xff]  ;;  %v18_v7 = vld [vmem:[%s349_s0 + $0x10] sm:$0xff]  ;;  %246 = vset.pattern.permute.xlu0 %v248_v8 }
   0x3   :  { %v233_v9 = vpack.c.bf16 %v213_v5, %v211_v2  ;;  %v225_v10 = vpack.c.bf16 %v18_v7, %v16_v6  ;;  %v210_v11 = vld [vmem:[%s349_s0 + $0x40] sm:$0xff]  ;;  %v212_v12 = vld [vmem:[%s349_s0 + $0x50] sm:$0xff]  ;;  %v21_v13 = vld [vmem:[%s349_s0 + $0x28] sm:$0xff] }
   0x4   :  { %224 = vmatprep.subr.bf16.mxu0 %v223_v4  ;;  %v235_v14 = vpack.c.bf16 %v212_v12, %v210_v11  ;;  %v23_v15 = vld [vmem:[%s349_s0 + $0x38] sm:$0x7]  ;;  %vm301_vm2 = vmpackc.low %vm33_vm0, %vm249_vm1  ;;  %v215_v17 = vld [vmem:[%s349_s0 + $0x68] sm:$0xff] }
   0x5   :  { %234 = vmatprep.subr.bf16.mxu1 %v233_v9  ;;  %226 = vmatpush1.bf16.msra.mxu0 %v225_v10  ;;  %v227_v18 = vpack.c.bf16 %v23_v15, %v21_v13  ;;  %v217_v19 = vld [vmem:[%s349_s0 + $0x78] sm:$0x7]  ;;  %v20_v20 = vld [vmem:[%s349_s0 + $0x20] sm:$0xff]  ;;  %v22_v21 = vld [vmem:[%s349_s0 + $0x30] sm:$0x7] }
   0x6   :  { %236 = vmatpush1.bf16.msra.mxu1 %v235_v14  ;;  %v237_v22 = vpack.c.bf16 %v217_v19, %v215_v17  ;;  %v230_v23 = vpack.c.bf16 %v22_v21, %v20_v20  ;;  %v214_v24 = vld [vmem:[%s349_s0 + $0x60] sm:$0xff]  ;;  %v216_v25 = vld [vmem:[%s349_s0 + $0x70] sm:$0x7] }
   0x7   :  { %229 = vmatprep.subr.msk.bf16.mxu0 %vm301_vm2, %v227_v18  ;;  %v240_v26 = vpack.c.bf16 %v216_v25, %v214_v24  ;;  %v15_v27 = vld [vmem:[%s350_s2] sm:$0x3f] }
   0x8   :  { %239 = vmatprep.subr.msk.bf16.mxu1 %vm301_vm2, %v237_v22  ;;  %26 = vperm.xlu0 %246, %v15_v27   ;;  %v14_v28 = vld [vmem:[%s351_s1] sm:$0x3f] }
   0x9   :  { %232 = vmatpush1.bf16.msk.msra.mxu0 %vm301_vm2, %v230_v23 }
   0xa   :  { %242 = vmatpush1.bf16.msk.msra.mxu1 %vm301_vm2, %v240_v26 }
   0xc   :  { %209 = vmatmul.mubr.msk.f32.vlgmr.msra.gmra.mrb[0].mxu0 %vm29_vm3, %v14_v28 }
   0xd   :  { %220 = vmatmul.mubr.msk.f32.vlgmr.msra.gmra.mrb[0].mxu1 %vm29_vm3, %v14_v28 }
  0x87   :  { %v27_v29 = vpop.permute.xlu0 %26 }
  0xdf   :  { %v106_v30 = vpop.f32.mrb[0].mxu0 }
  0xe0   :  { %v107_v31 = vadd.f32 %v106_v30, %v27_v29  ;;  %v195_v32 = vpop.f32.mrb[0].mxu1  ;;  %v108_v33 = vpop.f32.mrb[1].mxu0 }
  0xe1   :  { %v196_v34 = vadd.f32 %v195_v32, %v27_v29  ;;  %v109_v35 = vadd.f32 %v108_v33, %v27_v29  ;;  %v197_v36 = vpop.f32.mrb[1].mxu1 }
  0xe2   :  { %111 = vst [vmem:[%s352_s3] sm:$0x3f] %v107_v31  ;;  %v198_v37 = vadd.f32 %v197_v36, %v27_v29 }
  0xe3   :  { %221 = vst [vmem:[%s352_s3 + $0x10] sm:$0x3f] %v196_v34  ;;  %113 = vst.msk [vmem:[%s352_s3 + $0x8] sm:$0x3f] %vm112_vm4, %v109_v35 }
  0xe4   :  { %222 = vst.msk [vmem:[%s352_s3 + $0x18] sm:$0x3f] %vm112_vm4, %v198_v37 }

</bundles_post_ra>
